<compile_context>
chip_gen: v7x
topology: tpu7x:2x2x1
jax: 0.10.0
libtpu: 0.0.40
codegen_flags: <defaults>
</compile_context>

<pallas_src>
import functools
import math

import jax
import jax.numpy as jnp
from jax.experimental import pallas as pl
from jax.experimental.pallas import tpu as pltpu

LN2 = math.log(2.0)
INV_LN2 = 1.0 / LN2


# ---------------- fused Pallas kernel ----------------
def _approx_ndcg_kernel(t_ref, s_ref, o_ref, *, tau, list_size):
    """One grid step over a (L, TB) tile: lanes = batch rows, sublanes = list positions."""
    f32 = jnp.float32
    L = list_size

    # ---- targets-only phase (keep the live set small through the unrolled rank loop) ----
    t = t_ref[...].astype(f32)                                   # (L, TB)
    TB = t.shape[1]
    row = jax.lax.broadcasted_iota(jnp.int32, (L, TB), 0)        # sublane index l

    # Exact stable-descending ranks (identical multiset of positions to torch.sort(descending)):
    #   rank[l] = #{j : t[j] > t[l]} + #{j < l : t[j] == t[l]}
    # Pair for shift d is j = (l - d) mod L, and  j < l  <=>  l >= d.
    rank = jnp.zeros((L, TB), f32)
    use_roll = (L % 8 == 0)  # sublane rotate wants an aligned sublane extent
    # TODO(synk): for large L with small integer relevance grades, switch to the O(L*G)
    # per-row grade-histogram rank formulation instead of this exact O(L^2) unrolled loop.
    if use_roll:
        for d in range(1, L):
            rd = pltpu.roll(t, shift=d, axis=0)                  # XLU sublane rotate (free slot)
            cond = (rd > t) | ((rd == t) & (row >= d))           # single fused mask
            rank = rank + cond.astype(f32)
    else:
        for j in range(L):
            tj = t[j:j + 1, :]                                   # (1, TB) sublane slice
            cond = (tj > t) | ((tj == t) & (row > j))
            rank = rank + cond.astype(f32)

    # gains = 2^t - 1  (EUP exp)
    gains = jnp.exp(t * LN2) - 1.0

    # ideal DCG = sum_l gains[l] / log2(rank[l] + 2)   (reciprocal-multiply, EUP approx)
    ideal_disc = jnp.log(rank + 2.0) * INV_LN2
    ideal_dcg = jnp.sum(gains * pl.reciprocal(ideal_disc, approx=True),
                        axis=0, keepdims=True)                   # (1, TB)

    # ---- scores phase: softmax(scores / tau) folded into the DCG numerator ----
    s = s_ref[...].astype(f32)
    z = s * (1.0 / tau)
    z = z - jnp.max(z, axis=0, keepdims=True)
    e = jnp.exp(z)
    denom = jnp.sum(e, axis=0, keepdims=True)                    # (1, TB)

    pos = jax.lax.broadcasted_iota(jnp.int32, (L, 1), 0).astype(f32)
    inv_disc = pl.reciprocal(jnp.log(pos + 2.0) * INV_LN2, approx=True)   # 1/log2(pos+2), (L,1)

    numer = jnp.sum(e * gains * inv_disc, axis=0, keepdims=True)          # (1, TB)
    expected_dcg = numer * pl.reciprocal(denom, approx=True)

    ndcg = expected_dcg * pl.reciprocal(ideal_dcg + 1e-8, approx=True)
    o_ref[...] = (1.0 - ndcg).astype(o_ref.dtype)                # (1, TB) lane-dense store


# ---------------- wrapper ----------------
def _round_up(x, m):
    return ((x + m - 1) // m) * m


@functools.partial(jax.jit, static_argnames=("tau",))
def approx_ndcg_loss(scores, targets, tau=1.0):
    scores = scores.astype(jnp.float32)
    targets = targets.astype(jnp.float32)
    B, L = scores.shape

    # Lane-dense layout plumbing: batch -> lanes (last dim), list positions -> sublanes.
    s_t = scores.T                                               # (L, B)
    t_t = targets.T

    # Rows (lanes) per grid step: multiple of 128; large to amortize the ~0.35 us/step overhead,
    # capped so (2 inputs x 2 pipeline buffers + ~8 live (L,TB) f32 temps) stays under ~48 MiB
    # (v7x VMEM is 64 MiB), and split so >= 2 "parallel" steps exist when B allows (v7x megacore).
    TB = 512
    while TB > 128 and 12 * L * TB * 4 > 48 * 1024 * 1024:
        TB //= 2
    TB = min(TB, _round_up(B, 128))
    if B > 128 and pl.cdiv(B, TB) < 2:
        TB = max(128, _round_up(pl.cdiv(B, 2), 128))
    num_steps = pl.cdiv(B, TB)

    kernel = functools.partial(_approx_ndcg_kernel, tau=float(tau), list_size=L)

    params = {"dimension_semantics": ("parallel",)}
    vmem_est = 12 * L * TB * 4
    if vmem_est > 30 * 1024 * 1024:
        params["vmem_limit_bytes"] = min(100 * 1024 * 1024, 2 * vmem_est)

    per_row = pl.pallas_call(
        kernel,
        out_shape=jax.ShapeDtypeStruct((1, num_steps * TB), jnp.float32),
        grid=(num_steps,),
        in_specs=[
            pl.BlockSpec((L, TB), lambda i: (0, i)),             # targets (lane-dense)
            pl.BlockSpec((L, TB), lambda i: (0, i)),             # scores  (lane-dense)
        ],
        out_specs=pl.BlockSpec((1, TB), lambda i: (0, i)),       # lane-dense per-row loss
        compiler_params=pltpu.CompilerParams(**params),
    )(t_t, s_t)

    # final scalar mean over the real (unpadded) rows — trivial wrapper glue
    return jnp.mean(per_row[0, :B])


# ---------------- pure-JAX reference (for a sanity check) ----------------
def _reference(scores, targets, tau=1.0):
    _, L = scores.shape
    ideal = -jnp.sort(-targets, axis=1)                          # descending sort
    gains_ideal = jnp.power(2.0, ideal) - 1.0
    discounts = jnp.log2(jnp.arange(L, dtype=jnp.float32) + 2.0)
    ideal_dcg = jnp.sum(gains_ideal / discounts, axis=1)
    probs = jax.nn.softmax(scores / tau, axis=1)
    gains = jnp.power(2.0, targets) - 1.0
    expected_dcg = jnp.sum(probs * gains / discounts, axis=1)
    return jnp.mean(1.0 - expected_dcg / (ideal_dcg + 1e-8))


if __name__ == "__main__":
    key = jax.random.PRNGKey(0)
    ks, kt = jax.random.split(key)

    B, L = 4, 16   # (batch_size, list_size)
    scores = jax.random.normal(ks, (B, L), dtype=jnp.float32)
    # graded relevance labels in {0,...,4}, with ties, to exercise the rank logic
    targets = jax.random.randint(kt, (B, L), 0, 5).astype(jnp.float32)

    loss = approx_ndcg_loss(scores, targets, tau=1.0)
    loss = jax.block_until_ready(loss)

    ref = _reference(scores, targets, tau=1.0)
    assert loss.shape == ()
    assert bool(jnp.isfinite(loss))
    assert abs(float(loss) - float(ref)) < 1e-2, (float(loss), float(ref))
    print("KERNEL_OK")
</pallas_src>

<mosaic_0001>
module attributes {stable_mosaic.version = 11 : i64} {
  func.func @_approx_ndcg_kernel(%arg0: i32, %arg1: memref<16x128xf32, #tpu.memory_space<vmem>>, %arg2: memref<16x128xf32, #tpu.memory_space<vmem>>, %arg3: memref<1x128xf32, #tpu.memory_space<vmem>>) attributes {dimension_semantics = [#tpu.dimension_semantics<parallel>], iteration_bounds = array<i64: 1>, scalar_prefetch = 0 : i64, scratch_operands = 0 : i64, tpu.core_type = #tpu.core_type<tc>, window_params = [{transform_indices = @transform_0, window_bounds = array<i64: 16, 128>}, {transform_indices = @transform_1, window_bounds = array<i64: 16, 128>}, {transform_indices = @transform_2, window_bounds = array<i64: 1, 128>}]} {
    %c0 = arith.constant 0 : index
    %c0_0 = arith.constant 0 : index
    %0 = vector.load %arg1[%c0, %c0_0] : memref<16x128xf32, #tpu.memory_space<vmem>>, vector<16x128xf32>
    %1 = tpu.iota {dimensions = array<i32: 0>} : vector<16x128xi32>
    %cst = arith.constant 0.000000e+00 : f32
    %2 = vector.broadcast %cst : f32 to vector<16x128xf32>
    %c1_i32 = arith.constant 1 : i32
    %3 = tpu.dynamic_rotate %0 by %c1_i32 dim 0 : vector<16x128xf32>, i32 -> vector<16x128xf32>
    %4 = arith.cmpf ogt, %3, %0 : vector<16x128xf32>
    %5 = arith.cmpf oeq, %3, %0 : vector<16x128xf32>
    %c1_i32_1 = arith.constant 1 : i32
    %6 = vector.broadcast %c1_i32_1 : i32 to vector<16x128xi32>
    %7 = arith.cmpi sge, %1, %6 : vector<16x128xi32>
    %8 = arith.andi %5, %7 : vector<16x128xi1>
    %9 = arith.ori %4, %8 : vector<16x128xi1>
    %10 = arith.extui %9 : vector<16x128xi1> to vector<16x128xi32>
    %11 = arith.sitofp %10 : vector<16x128xi32> to vector<16x128xf32>
    %12 = arith.addf %2, %11 : vector<16x128xf32>
    %c2_i32 = arith.constant 2 : i32
    %13 = tpu.dynamic_rotate %0 by %c2_i32 dim 0 : vector<16x128xf32>, i32 -> vector<16x128xf32>
    %14 = arith.cmpf ogt, %13, %0 : vector<16x128xf32>
    %15 = arith.cmpf oeq, %13, %0 : vector<16x128xf32>
    %c2_i32_2 = arith.constant 2 : i32
    %16 = vector.broadcast %c2_i32_2 : i32 to vector<16x128xi32>
    %17 = arith.cmpi sge, %1, %16 : vector<16x128xi32>
    %18 = arith.andi %15, %17 : vector<16x128xi1>
    %19 = arith.ori %14, %18 : vector<16x128xi1>
    %20 = arith.extui %19 : vector<16x128xi1> to vector<16x128xi32>
    %21 = arith.sitofp %20 : vector<16x128xi32> to vector<16x128xf32>
    %22 = arith.addf %12, %21 : vector<16x128xf32>
    %c3_i32 = arith.constant 3 : i32
    %23 = tpu.dynamic_rotate %0 by %c3_i32 dim 0 : vector<16x128xf32>, i32 -> vector<16x128xf32>
    %24 = arith.cmpf ogt, %23, %0 : vector<16x128xf32>
    %25 = arith.cmpf oeq, %23, %0 : vector<16x128xf32>
    %c3_i32_3 = arith.constant 3 : i32
    %26 = vector.broadcast %c3_i32_3 : i32 to vector<16x128xi32>
    %27 = arith.cmpi sge, %1, %26 : vector<16x128xi32>
    %28 = arith.andi %25, %27 : vector<16x128xi1>
    %29 = arith.ori %24, %28 : vector<16x128xi1>
    %30 = arith.extui %29 : vector<16x128xi1> to vector<16x128xi32>
    %31 = arith.sitofp %30 : vector<16x128xi32> to vector<16x128xf32>
    %32 = arith.addf %22, %31 : vector<16x128xf32>
    %c4_i32 = arith.constant 4 : i32
    %33 = tpu.dynamic_rotate %0 by %c4_i32 dim 0 : vector<16x128xf32>, i32 -> vector<16x128xf32>
    %34 = arith.cmpf ogt, %33, %0 : vector<16x128xf32>
    %35 = arith.cmpf oeq, %33, %0 : vector<16x128xf32>
    %c4_i32_4 = arith.constant 4 : i32
    %36 = vector.broadcast %c4_i32_4 : i32 to vector<16x128xi32>
    %37 = arith.cmpi sge, %1, %36 : vector<16x128xi32>
    %38 = arith.andi %35, %37 : vector<16x128xi1>
    %39 = arith.ori %34, %38 : vector<16x128xi1>
    %40 = arith.extui %39 : vector<16x128xi1> to vector<16x128xi32>
    %41 = arith.sitofp %40 : vector<16x128xi32> to vector<16x128xf32>
    %42 = arith.addf %32, %41 : vector<16x128xf32>
    %c5_i32 = arith.constant 5 : i32
    %43 = tpu.dynamic_rotate %0 by %c5_i32 dim 0 : vector<16x128xf32>, i32 -> vector<16x128xf32>
    %44 = arith.cmpf ogt, %43, %0 : vector<16x128xf32>
    %45 = arith.cmpf oeq, %43, %0 : vector<16x128xf32>
    %c5_i32_5 = arith.constant 5 : i32
    %46 = vector.broadcast %c5_i32_5 : i32 to vector<16x128xi32>
    %47 = arith.cmpi sge, %1, %46 : vector<16x128xi32>
    %48 = arith.andi %45, %47 : vector<16x128xi1>
    %49 = arith.ori %44, %48 : vector<16x128xi1>
    %50 = arith.extui %49 : vector<16x128xi1> to vector<16x128xi32>
    %51 = arith.sitofp %50 : vector<16x128xi32> to vector<16x128xf32>
    %52 = arith.addf %42, %51 : vector<16x128xf32>
    %c6_i32 = arith.constant 6 : i32
    %53 = tpu.dynamic_rotate %0 by %c6_i32 dim 0 : vector<16x128xf32>, i32 -> vector<16x128xf32>
    %54 = arith.cmpf ogt, %53, %0 : vector<16x128xf32>
    %55 = arith.cmpf oeq, %53, %0 : vector<16x128xf32>
    %c6_i32_6 = arith.constant 6 : i32
    %56 = vector.broadcast %c6_i32_6 : i32 to vector<16x128xi32>
    %57 = arith.cmpi sge, %1, %56 : vector<16x128xi32>
    %58 = arith.andi %55, %57 : vector<16x128xi1>
    %59 = arith.ori %54, %58 : vector<16x128xi1>
    %60 = arith.extui %59 : vector<16x128xi1> to vector<16x128xi32>
    %61 = arith.sitofp %60 : vector<16x128xi32> to vector<16x128xf32>
    %62 = arith.addf %52, %61 : vector<16x128xf32>
    %c7_i32 = arith.constant 7 : i32
    %63 = tpu.dynamic_rotate %0 by %c7_i32 dim 0 : vector<16x128xf32>, i32 -> vector<16x128xf32>
    %64 = arith.cmpf ogt, %63, %0 : vector<16x128xf32>
    %65 = arith.cmpf oeq, %63, %0 : vector<16x128xf32>
    %c7_i32_7 = arith.constant 7 : i32
    %66 = vector.broadcast %c7_i32_7 : i32 to vector<16x128xi32>
    %67 = arith.cmpi sge, %1, %66 : vector<16x128xi32>
    %68 = arith.andi %65, %67 : vector<16x128xi1>
    %69 = arith.ori %64, %68 : vector<16x128xi1>
    %70 = arith.extui %69 : vector<16x128xi1> to vector<16x128xi32>
    %71 = arith.sitofp %70 : vector<16x128xi32> to vector<16x128xf32>
    %72 = arith.addf %62, %71 : vector<16x128xf32>
    %c8_i32 = arith.constant 8 : i32
    %73 = tpu.dynamic_rotate %0 by %c8_i32 dim 0 : vector<16x128xf32>, i32 -> vector<16x128xf32>
    %74 = arith.cmpf ogt, %73, %0 : vector<16x128xf32>
    %75 = arith.cmpf oeq, %73, %0 : vector<16x128xf32>
    %c8_i32_8 = arith.constant 8 : i32
    %76 = vector.broadcast %c8_i32_8 : i32 to vector<16x128xi32>
    %77 = arith.cmpi sge, %1, %76 : vector<16x128xi32>
    %78 = arith.andi %75, %77 : vector<16x128xi1>
    %79 = arith.ori %74, %78 : vector<16x128xi1>
    %80 = arith.extui %79 : vector<16x128xi1> to vector<16x128xi32>
    %81 = arith.sitofp %80 : vector<16x128xi32> to vector<16x128xf32>
    %82 = arith.addf %72, %81 : vector<16x128xf32>
    %c9_i32 = arith.constant 9 : i32
    %83 = tpu.dynamic_rotate %0 by %c9_i32 dim 0 : vector<16x128xf32>, i32 -> vector<16x128xf32>
    %84 = arith.cmpf ogt, %83, %0 : vector<16x128xf32>
    %85 = arith.cmpf oeq, %83, %0 : vector<16x128xf32>
    %c9_i32_9 = arith.constant 9 : i32
    %86 = vector.broadcast %c9_i32_9 : i32 to vector<16x128xi32>
    %87 = arith.cmpi sge, %1, %86 : vector<16x128xi32>
    %88 = arith.andi %85, %87 : vector<16x128xi1>
    %89 = arith.ori %84, %88 : vector<16x128xi1>
    %90 = arith.extui %89 : vector<16x128xi1> to vector<16x128xi32>
    %91 = arith.sitofp %90 : vector<16x128xi32> to vector<16x128xf32>
    %92 = arith.addf %82, %91 : vector<16x128xf32>
    %c10_i32 = arith.constant 10 : i32
    %93 = tpu.dynamic_rotate %0 by %c10_i32 dim 0 : vector<16x128xf32>, i32 -> vector<16x128xf32>
    %94 = arith.cmpf ogt, %93, %0 : vector<16x128xf32>
    %95 = arith.cmpf oeq, %93, %0 : vector<16x128xf32>
    %c10_i32_10 = arith.constant 10 : i32
    %96 = vector.broadcast %c10_i32_10 : i32 to vector<16x128xi32>
    %97 = arith.cmpi sge, %1, %96 : vector<16x128xi32>
    %98 = arith.andi %95, %97 : vector<16x128xi1>
    %99 = arith.ori %94, %98 : vector<16x128xi1>
    %100 = arith.extui %99 : vector<16x128xi1> to vector<16x128xi32>
    %101 = arith.sitofp %100 : vector<16x128xi32> to vector<16x128xf32>
    %102 = arith.addf %92, %101 : vector<16x128xf32>
    %c11_i32 = arith.constant 11 : i32
    %103 = tpu.dynamic_rotate %0 by %c11_i32 dim 0 : vector<16x128xf32>, i32 -> vector<16x128xf32>
    %104 = arith.cmpf ogt, %103, %0 : vector<16x128xf32>
    %105 = arith.cmpf oeq, %103, %0 : vector<16x128xf32>
    %c11_i32_11 = arith.constant 11 : i32
    %106 = vector.broadcast %c11_i32_11 : i32 to vector<16x128xi32>
    %107 = arith.cmpi sge, %1, %106 : vector<16x128xi32>
    %108 = arith.andi %105, %107 : vector<16x128xi1>
    %109 = arith.ori %104, %108 : vector<16x128xi1>
    %110 = arith.extui %109 : vector<16x128xi1> to vector<16x128xi32>
    %111 = arith.sitofp %110 : vector<16x128xi32> to vector<16x128xf32>
    %112 = arith.addf %102, %111 : vector<16x128xf32>
    %c12_i32 = arith.constant 12 : i32
    %113 = tpu.dynamic_rotate %0 by %c12_i32 dim 0 : vector<16x128xf32>, i32 -> vector<16x128xf32>
    %114 = arith.cmpf ogt, %113, %0 : vector<16x128xf32>
    %115 = arith.cmpf oeq, %113, %0 : vector<16x128xf32>
    %c12_i32_12 = arith.constant 12 : i32
    %116 = vector.broadcast %c12_i32_12 : i32 to vector<16x128xi32>
    %117 = arith.cmpi sge, %1, %116 : vector<16x128xi32>
    %118 = arith.andi %115, %117 : vector<16x128xi1>
    %119 = arith.ori %114, %118 : vector<16x128xi1>
    %120 = arith.extui %119 : vector<16x128xi1> to vector<16x128xi32>
    %121 = arith.sitofp %120 : vector<16x128xi32> to vector<16x128xf32>
    %122 = arith.addf %112, %121 : vector<16x128xf32>
    %c13_i32 = arith.constant 13 : i32
    %123 = tpu.dynamic_rotate %0 by %c13_i32 dim 0 : vector<16x128xf32>, i32 -> vector<16x128xf32>
    %124 = arith.cmpf ogt, %123, %0 : vector<16x128xf32>
    %125 = arith.cmpf oeq, %123, %0 : vector<16x128xf32>
    %c13_i32_13 = arith.constant 13 : i32
    %126 = vector.broadcast %c13_i32_13 : i32 to vector<16x128xi32>
    %127 = arith.cmpi sge, %1, %126 : vector<16x128xi32>
    %128 = arith.andi %125, %127 : vector<16x128xi1>
    %129 = arith.ori %124, %128 : vector<16x128xi1>
    %130 = arith.extui %129 : vector<16x128xi1> to vector<16x128xi32>
    %131 = arith.sitofp %130 : vector<16x128xi32> to vector<16x128xf32>
    %132 = arith.addf %122, %131 : vector<16x128xf32>
    %c14_i32 = arith.constant 14 : i32
    %133 = tpu.dynamic_rotate %0 by %c14_i32 dim 0 : vector<16x128xf32>, i32 -> vector<16x128xf32>
    %134 = arith.cmpf ogt, %133, %0 : vector<16x128xf32>
    %135 = arith.cmpf oeq, %133, %0 : vector<16x128xf32>
    %c14_i32_14 = arith.constant 14 : i32
    %136 = vector.broadcast %c14_i32_14 : i32 to vector<16x128xi32>
    %137 = arith.cmpi sge, %1, %136 : vector<16x128xi32>
    %138 = arith.andi %135, %137 : vector<16x128xi1>
    %139 = arith.ori %134, %138 : vector<16x128xi1>
    %140 = arith.extui %139 : vector<16x128xi1> to vector<16x128xi32>
    %141 = arith.sitofp %140 : vector<16x128xi32> to vector<16x128xf32>
    %142 = arith.addf %132, %141 : vector<16x128xf32>
    %c15_i32 = arith.constant 15 : i32
    %143 = tpu.dynamic_rotate %0 by %c15_i32 dim 0 : vector<16x128xf32>, i32 -> vector<16x128xf32>
    %144 = arith.cmpf ogt, %143, %0 : vector<16x128xf32>
    %145 = arith.cmpf oeq, %143, %0 : vector<16x128xf32>
    %c15_i32_15 = arith.constant 15 : i32
    %146 = vector.broadcast %c15_i32_15 : i32 to vector<16x128xi32>
    %147 = arith.cmpi sge, %1, %146 : vector<16x128xi32>
    %148 = arith.andi %145, %147 : vector<16x128xi1>
    %149 = arith.ori %144, %148 : vector<16x128xi1>
    %150 = arith.extui %149 : vector<16x128xi1> to vector<16x128xi32>
    %151 = arith.sitofp %150 : vector<16x128xi32> to vector<16x128xf32>
    %152 = arith.addf %142, %151 : vector<16x128xf32>
    %cst_16 = arith.constant 0.693147182 : f32
    %153 = vector.broadcast %cst_16 : f32 to vector<16x128xf32>
    %154 = arith.mulf %0, %153 : vector<16x128xf32>
    %155 = math.exp %154 : vector<16x128xf32>
    %cst_17 = arith.constant 1.000000e+00 : f32
    %156 = vector.broadcast %cst_17 : f32 to vector<16x128xf32>
    %157 = arith.subf %155, %156 : vector<16x128xf32>
    %cst_18 = arith.constant 2.000000e+00 : f32
    %158 = vector.broadcast %cst_18 : f32 to vector<16x128xf32>
    %159 = arith.addf %152, %158 : vector<16x128xf32>
    %160 = math.log %159 : vector<16x128xf32>
    %cst_19 = arith.constant 1.44269502 : f32
    %161 = vector.broadcast %cst_19 : f32 to vector<16x128xf32>
    %162 = arith.mulf %160, %161 : vector<16x128xf32>
    %163 = tpu.reciprocal %162 {approx = true} : vector<16x128xf32> -> vector<16x128xf32>
    %164 = arith.mulf %157, %163 : vector<16x128xf32>
    %cst_20 = arith.constant dense<0.000000e+00> : vector<128xf32>
    %165 = vector.multi_reduction <add>, %164, %cst_20 [0] : vector<16x128xf32> to vector<128xf32>
    %166 = vector.shape_cast %165 : vector<128xf32> to vector<1x128xf32>
    %c0_21 = arith.constant 0 : index
    %c0_22 = arith.constant 0 : index
    %167 = vector.load %arg2[%c0_21, %c0_22] : memref<16x128xf32, #tpu.memory_space<vmem>>, vector<16x128xf32>
    %cst_23 = arith.constant 1.000000e+00 : f32
    %168 = vector.broadcast %cst_23 : f32 to vector<16x128xf32>
    %169 = arith.mulf %167, %168 : vector<16x128xf32>
    %cst_24 = arith.constant dense<0xFF800000> : vector<128xf32>
    %170 = vector.multi_reduction <maximumf>, %169, %cst_24 [0] : vector<16x128xf32> to vector<128xf32>
    %171 = vector.shape_cast %170 : vector<128xf32> to vector<1x128xf32>
    %172 = vector.broadcast %171 : vector<1x128xf32> to vector<16x128xf32>
    %173 = arith.subf %169, %172 : vector<16x128xf32>
    %174 = math.exp %173 : vector<16x128xf32>
    %cst_25 = arith.constant dense<0.000000e+00> : vector<128xf32>
    %175 = vector.multi_reduction <add>, %174, %cst_25 [0] : vector<16x128xf32> to vector<128xf32>
    %176 = vector.shape_cast %175 : vector<128xf32> to vector<1x128xf32>
    %177 = tpu.iota {dimensions = array<i32: 0>} : vector<16x1xi32>
    %178 = arith.sitofp %177 : vector<16x1xi32> to vector<16x1xf32>
    %cst_26 = arith.constant 2.000000e+00 : f32
    %179 = vector.broadcast %cst_26 : f32 to vector<16x1xf32>
    %180 = arith.addf %178, %179 : vector<16x1xf32>
    %181 = math.log %180 : vector<16x1xf32>
    %cst_27 = arith.constant 1.44269502 : f32
    %182 = vector.broadcast %cst_27 : f32 to vector<16x1xf32>
    %183 = arith.mulf %181, %182 : vector<16x1xf32>
    %184 = tpu.reciprocal %183 {approx = true} : vector<16x1xf32> -> vector<16x1xf32>
    %185 = arith.mulf %174, %157 : vector<16x128xf32>
    %186 = vector.broadcast %184 : vector<16x1xf32> to vector<16x128xf32>
    %187 = arith.mulf %185, %186 : vector<16x128xf32>
    %cst_28 = arith.constant dense<0.000000e+00> : vector<128xf32>
    %188 = vector.multi_reduction <add>, %187, %cst_28 [0] : vector<16x128xf32> to vector<128xf32>
    %189 = vector.shape_cast %188 : vector<128xf32> to vector<1x128xf32>
    %190 = tpu.reciprocal %176 {approx = true} : vector<1x128xf32> -> vector<1x128xf32>
    %191 = arith.mulf %189, %190 : vector<1x128xf32>
    %cst_29 = arith.constant 9.99999993E-9 : f32
    %192 = vector.broadcast %cst_29 : f32 to vector<1x128xf32>
    %193 = arith.addf %166, %192 : vector<1x128xf32>
    %194 = tpu.reciprocal %193 {approx = true} : vector<1x128xf32> -> vector<1x128xf32>
    %195 = arith.mulf %191, %194 : vector<1x128xf32>
    %cst_30 = arith.constant 1.000000e+00 : f32
    %196 = vector.broadcast %cst_30 : f32 to vector<1x128xf32>
    %197 = arith.subf %196, %195 : vector<1x128xf32>
    %c0_31 = arith.constant 0 : index
    %c0_32 = arith.constant 0 : index
    %198 = vector.load %arg3[%c0_31, %c0_32] : memref<1x128xf32, #tpu.memory_space<vmem>>, vector<1x128xf32>
    tpu.vector_store %arg3[%c0_31, %c0_32], %197 {strides = array<i32>} : memref<1x128xf32, #tpu.memory_space<vmem>>, vector<1x128xf32>,
    return
  }
  func.func @transform_0(%arg0: i32) -> (i32, i32) {
    %c0_i32 = arith.constant 0 : i32
    %c0_i32_0 = arith.constant 0 : i32
    return %c0_i32, %arg0 : i32, i32
  }
  func.func @transform_1(%arg0: i32) -> (i32, i32) {
    %c0_i32 = arith.constant 0 : i32
    %c0_i32_0 = arith.constant 0 : i32
    return %c0_i32, %arg0 : i32, i32
  }
  func.func @transform_2(%arg0: i32) -> (i32, i32) {
    %c0_i32 = arith.constant 0 : i32
    %c0_i32_0 = arith.constant 0 : i32
    return %c0_i32, %arg0 : i32, i32
  }
}

</mosaic_0001>

<bundles_post_ra>
// kernel: approx_ndcg_loss.1
= control target key start
LH: loop header
LB: loop body
LE: loop exit
PB: predicated region body
PF: predicated region fallthrough
CT: control target
= control target key end

     0   :  { %v13_v0 = vlaneseq  ;;  %v435_v17 = vmov 0.0   ;;  %s753_s0 = inlined_call_operand.vmem [shape: f32[16,4], index: 0, kind: input, shape index: {}]   ;;  %s754_s1 = inlined_call_operand.vmem [shape: f32[16,4], index: 1, kind: input, shape index: {}]   ;;  %s755_s2 = inlined_call_operand.vmem [shape: f32[1,128], index: 2, kind: output, shape index: {}]  }
   0x1   :  { %v454_v1 = vld [vmem:[%s753_s0] sm:$0xff]  ;;  %v459_v2 = vld [vmem:[%s753_s0 + $0x8] sm:$0xff] }
   0x2   :  { %v461_v3 = vshrl.u32 %v13_v0, 7  ;;  %v16_v4 = vrot.slane %v454_v1, 7  ;;  %v17_v5 = vrot.slane %v459_v2, 7  ;;  %v37_v6 = vrot.slane %v454_v1, 6 }
   0x3   :  { %v38_v7 = vrot.slane %v459_v2, 6  ;;  %v58_v8 = vrot.slane %v454_v1, 5  ;;  %v59_v9 = vrot.slane %v459_v2, 5  ;;  %v79_v10 = vrot.slane %v454_v1, 4 }
   0x4   :  { %v471_v11 = vadd.s32 8, %v461_v3  ;;  %vm18_vm0 = vcmp.lt.s32.totalorder %v461_v3, 1  ;;  %vm25_vm1 = vcmp.ge.s32.totalorder %v461_v3, 1  ;;  %vm39_vm2 = vcmp.lt.s32.totalorder %v461_v3, 2 }
   0x5   :  { %v476_v12 = vsel %vm18_vm0, %v16_v4, %v17_v5  ;;  %v478_v13 = vsel %vm18_vm0, %v17_v5, %v16_v4  ;;  %v480_v14 = vsel %vm39_vm2, %v37_v6, %v38_v7  ;;  %v482_v15 = vsel %vm39_vm2, %v38_v7, %v37_v6 }
   0x6   :  { %vm21_vm3 = vcmp.gt.f32.partialorder %v478_v13, %v454_v1  ;;  %vm22_vm4 = vcmp.gt.f32.partialorder %v476_v12, %v459_v2  ;;  %vm23_vm5 = vcmp.eq.f32.partialorder %v478_v13, %v454_v1  ;;  %vm24_vm6 = vcmp.eq.f32.partialorder %v476_v12, %v459_v2 }
   0x7   :  { %vm27_vm7 = vmand %vm23_vm5, %vm25_vm1  ;;  %vm42_vm8 = vcmp.gt.f32.partialorder %v482_v15, %v454_v1  ;;  %vm43_vm9 = vcmp.gt.f32.partialorder %v480_v14, %v459_v2  ;;  %vm44_vm10 = vcmp.eq.f32.partialorder %v482_v15, %v454_v1  ;;  %vm45_vm11 = vcmp.eq.f32.partialorder %v480_v14, %v459_v2 }
   0x8   :  { %vm29_vm12 = vmor %vm21_vm3, %vm27_vm7  ;;  %vm46_vm13 = vcmp.ge.s32.totalorder %v461_v3, 2  ;;  %vm60_vm14 = vcmp.lt.s32.totalorder %v461_v3, 3  ;;  %vm67_vm15 = vcmp.ge.s32.totalorder %v461_v3, 3  ;;  %v80_v16 = vrot.slane %v459_v2, 4 }
   0x9   :  { %vm30_vm0 = vmor %vm22_vm4, %vm24_vm6  ;;  %v374_v18 = vsel %vm29_vm12, 1.0, %v435_v17  ;;  %v505_v19 = vsel %vm60_vm14, %v58_v8, %v59_v9  ;;  %v507_v20 = vsel %vm60_vm14, %v59_v9, %v58_v8  ;;  %vm81_vm1 = vcmp.lt.s32.totalorder %v461_v3, 4 }
   0xa   :  { %v375_v21 = vsel %vm30_vm0, 1.0, %v435_v17  ;;  %vm48_vm2 = vmand %vm44_vm10, %vm46_vm13  ;;  %vm63_vm3 = vcmp.gt.f32.partialorder %v507_v20, %v454_v1  ;;  %vm64_vm5 = vcmp.gt.f32.partialorder %v505_v19, %v459_v2  ;;  %vm65_vm4 = vcmp.eq.f32.partialorder %v507_v20, %v454_v1 }
   0xb   :  { %vm50_vm6 = vmor %vm42_vm8, %vm48_vm2  ;;  %vm66_vm7 = vcmp.eq.f32.partialorder %v505_v19, %v459_v2  ;;  %v522_v22 = vsel %vm81_vm1, %v79_v10, %v80_v16  ;;  %v524_v23 = vsel %vm81_vm1, %v80_v16, %v79_v10  ;;  %vm88_vm10 = vcmp.ge.s32.totalorder %v461_v3, 4 }
   0xc   :  { %vm51_vm12 = vmor %vm43_vm9, %vm45_vm11  ;;  %v376_v24 = vsel %vm50_vm6, 1.0, %v435_v17  ;;  %vm84_vm8 = vcmp.gt.f32.partialorder %v524_v23, %v454_v1  ;;  %vm85_vm13 = vcmp.gt.f32.partialorder %v522_v22, %v459_v2  ;;  %vm86_vm14 = vcmp.eq.f32.partialorder %v524_v23, %v454_v1 }
   0xd   :  { %v377_v25 = vsel %vm51_vm12, 1.0, %v435_v17  ;;  %v56_v26 = vadd.f32 %v376_v24, %v374_v18  ;;  %vm69_vm0 = vmand %vm65_vm4, %vm67_vm15  ;;  %vm87_vm9 = vcmp.eq.f32.partialorder %v522_v22, %v459_v2  ;;  %v100_v27 = vrot.slane %v454_v1, 3 }
   0xe   :  { %v57_v28 = vadd.f32 %v377_v25, %v375_v21  ;;  %vm71_vm11 = vmor %vm63_vm3, %vm69_vm0  ;;  %v101_v29 = vrot.slane %v459_v2, 3  ;;  %vm102_vm1 = vcmp.lt.s32.totalorder %v461_v3, 5  ;;  %vm109_vm2 = vcmp.ge.s32.totalorder %v461_v3, 5 }
   0xf   :  { %vm72_vm15 = vmor %vm64_vm5, %vm66_vm7  ;;  %v378_v30 = vsel %vm71_vm11, 1.0, %v435_v17  ;;  %v121_v31 = vrot.slane %v454_v1, 2  ;;  %v122_v32 = vrot.slane %v459_v2, 2  ;;  %vm123_vm3 = vcmp.lt.s32.totalorder %v461_v3, 6 }
  0x10   :  { %v379_v33 = vsel %vm72_vm15, 1.0, %v435_v17  ;;  %v77_v34 = vadd.f32 %v378_v30, %v56_v26  ;;  %vm90_vm4 = vmand %vm86_vm14, %vm88_vm10  ;;  %v568_v35 = vsel %vm102_vm1, %v100_v27, %v101_v29  ;;  %v570_v36 = vsel %vm102_vm1, %v101_v29, %v100_v27 }
  0x11   :  { %v78_v37 = vadd.f32 %v379_v33, %v57_v28  ;;  %vm92_vm5 = vmor %vm84_vm8, %vm90_vm4  ;;  %vm105_vm6 = vcmp.gt.f32.partialorder %v570_v36, %v454_v1  ;;  %vm106_vm7 = vcmp.gt.f32.partialorder %v568_v35, %v459_v2  ;;  %vm107_vm12 = vcmp.eq.f32.partialorder %v570_v36, %v454_v1 }
  0x12   :  { %vm93_vm10 = vmor %vm85_vm13, %vm87_vm9  ;;  %v380_v38 = vsel %vm92_vm5, 1.0, %v435_v17  ;;  %vm108_vm8 = vcmp.eq.f32.partialorder %v568_v35, %v459_v2  ;;  %v590_v39 = vsel %vm123_vm3, %v121_v31, %v122_v32  ;;  %v592_v40 = vsel %vm123_vm3, %v122_v32, %v121_v31 }
  0x13   :  { %v381_v41 = vsel %vm93_vm10, 1.0, %v435_v17  ;;  %v98_v42 = vadd.f32 %v380_v38, %v77_v34  ;;  %vm111_vm14 = vmand %vm107_vm12, %vm109_vm2  ;;  %vm126_vm0 = vcmp.gt.f32.partialorder %v592_v40, %v454_v1  ;;  %vm127_vm13 = vcmp.gt.f32.partialorder %v590_v39, %v459_v2 }
  0x14   :  { %v99_v43 = vadd.f32 %v381_v41, %v78_v37  ;;  %vm113_vm9 = vmor %vm105_vm6, %vm111_vm14  ;;  %vm128_vm11 = vcmp.eq.f32.partialorder %v592_v40, %v454_v1  ;;  %vm129_vm1 = vcmp.eq.f32.partialorder %v590_v39, %v459_v2  ;;  %vm130_vm15 = vcmp.ge.s32.totalorder %v461_v3, 6 }
  0x15   :  { %vm114_vm2 = vmor %vm106_vm7, %vm108_vm8  ;;  %v382_v44 = vsel %vm113_vm9, 1.0, %v435_v17  ;;  %v142_v45 = vrot.slane %v454_v1, 1  ;;  %v143_v46 = vrot.slane %v459_v2, 1  ;;  %vm144_vm3 = vcmp.lt.s32.totalorder %v461_v3, 7 }
  0x16   :  { %v383_v47 = vsel %vm114_vm2, 1.0, %v435_v17  ;;  %v119_v48 = vadd.f32 %v382_v44, %v98_v42  ;;  %vm132_vm4 = vmand %vm128_vm11, %vm130_vm15  ;;  %vm151_vm5 = vcmp.ge.s32.totalorder %v461_v3, 7  ;;  %vm163_vm6 = vcmp.gt.f32.partialorder %v459_v2, %v454_v1 }
  0x17   :  { %v120_v49 = vadd.f32 %v383_v47, %v99_v43  ;;  %vm134_vm7 = vmor %vm126_vm0, %vm132_vm4  ;;  %v620_v50 = vsel %vm144_vm3, %v142_v45, %v143_v46  ;;  %v622_v51 = vsel %vm144_vm3, %v143_v46, %v142_v45  ;;  %vm164_vm12 = vcmp.gt.f32.partialorder %v454_v1, %v459_v2 }
  0x18   :  { %vm135_vm10 = vmor %vm127_vm13, %vm129_vm1  ;;  %v384_v52 = vsel %vm134_vm7, 1.0, %v435_v17  ;;  %vm147_vm8 = vcmp.gt.f32.partialorder %v622_v51, %v454_v1  ;;  %vm148_vm14 = vcmp.gt.f32.partialorder %v620_v50, %v459_v2  ;;  %vm149_vm0 = vcmp.eq.f32.partialorder %v622_v51, %v454_v1 }
  0x19   :  { %v385_v53 = vsel %vm135_vm10, 1.0, %v435_v17  ;;  %v140_v54 = vadd.f32 %v384_v52, %v119_v48  ;;  %vm150_vm9 = vcmp.eq.f32.partialorder %v620_v50, %v459_v2  ;;  %vm153_vm13 = vmand %vm149_vm0, %vm151_vm5  ;;  %vm166_vm11 = vcmp.eq.f32.partialorder %v454_v1, %v459_v2 }
  0x1a   :  { %v141_v55 = vadd.f32 %v385_v53, %v120_v49  ;;  %vm155_vm1 = vmor %vm147_vm8, %vm153_vm13  ;;  %v388_v56 = vsel %vm163_vm6, 1.0, %v435_v17  ;;  %vm179_vm15 = vcmp.gt.f32.partialorder %v476_v12, %v454_v1  ;;  %vm180_vm2 = vcmp.gt.f32.partialorder %v478_v13, %v459_v2 }
  0x1b   :  { %vm156_vm3 = vmor %vm148_vm14, %vm150_vm9  ;;  %v386_v57 = vsel %vm155_vm1, 1.0, %v435_v17  ;;  %vm182_vm4 = vcmp.eq.f32.partialorder %v478_v13, %v459_v2  ;;  %vm184_vm5 = vcmp.ge.s32.totalorder %v471_v11, 9  ;;  %v390_v58 = vsel %vm179_vm15, 1.0, %v435_v17 }
  0x1c   :  { %v387_v59 = vsel %vm156_vm3, 1.0, %v435_v17  ;;  %v161_v60 = vadd.f32 %v386_v57, %v140_v54  ;;  %vm172_vm6 = vmor %vm164_vm12, %vm166_vm11  ;;  %vm195_vm7 = vcmp.gt.f32.partialorder %v480_v14, %v454_v1  ;;  %vm196_vm10 = vcmp.gt.f32.partialorder %v482_v15, %v459_v2 }
  0x1d   :  { %v162_v61 = vadd.f32 %v387_v59, %v141_v55  ;;  %v389_v62 = vsel %vm172_vm6, 1.0, %v435_v17  ;;  %vm186_vm8 = vmand %vm182_vm4, %vm184_vm5  ;;  %vm198_vm14 = vcmp.eq.f32.partialorder %v482_v15, %v459_v2  ;;  %vm200_vm0 = vcmp.ge.s32.totalorder %v471_v11, 10 }
  0x1e   :  { %v177_v63 = vadd.f32 %v388_v56, %v161_v60  ;;  %vm188_vm12 = vmor %vm180_vm2, %vm186_vm8  ;;  %v392_v0 = vsel %vm195_vm7, 1.0, %v435_v17  ;;  %vm211_vm9 = vcmp.gt.f32.partialorder %v505_v19, %v454_v1  ;;  %vm212_vm13 = vcmp.gt.f32.partialorder %v507_v20, %v459_v2 }
  0x1f   :  { %v178_v4 = vadd.f32 %v389_v62, %v162_v61  ;;  %v391_v5 = vsel %vm188_vm12, 1.0, %v435_v17  ;;  %vm202_vm11 = vmand %vm198_vm14, %vm200_vm0  ;;  %vm214_vm1 = vcmp.eq.f32.partialorder %v507_v20, %v459_v2  ;;  %vm216_vm15 = vcmp.ge.s32.totalorder %v471_v11, 11 }
  0x20   :  { %v193_v6 = vadd.f32 %v390_v58, %v177_v63  ;;  %vm204_vm2 = vmor %vm196_vm10, %vm202_vm11  ;;  %v394_v7 = vsel %vm211_vm9, 1.0, %v435_v17  ;;  %vm227_vm3 = vcmp.gt.f32.partialorder %v522_v22, %v454_v1  ;;  %vm228_vm4 = vcmp.gt.f32.partialorder %v524_v23, %v459_v2  ;;  %v318_v22 = vld [vmem:[%s754_s1] sm:$0xff] }
  0x21   :  { %v194_v8 = vadd.f32 %v391_v5, %v178_v4  ;;  %v393_v9 = vsel %vm204_vm2, 1.0, %v435_v17  ;;  %vm218_vm5 = vmand %vm214_vm1, %vm216_vm15  ;;  %vm230_vm6 = vcmp.eq.f32.partialorder %v524_v23, %v459_v2  ;;  %vm232_vm7 = vcmp.ge.s32.totalorder %v471_v11, 12  ;;  %v319_v23 = vld [vmem:[%s754_s1 + $0x8] sm:$0xff] }
  0x22   :  { %v209_v10 = vadd.f32 %v392_v0, %v193_v6  ;;  %vm220_vm10 = vmor %vm212_vm13, %vm218_vm5  ;;  %v396_v12 = vsel %vm227_vm3, 1.0, %v435_v17  ;;  %vm243_vm8 = vcmp.gt.f32.partialorder %v568_v35, %v454_v1  ;;  %vm244_vm14 = vcmp.gt.f32.partialorder %v570_v36, %v459_v2 }
  0x23   :  { %v210_v13 = vadd.f32 %v393_v9, %v194_v8  ;;  %v395_v14 = vsel %vm220_vm10, 1.0, %v435_v17  ;;  %vm234_vm0 = vmand %vm230_vm6, %vm232_vm7  ;;  %vm246_vm12 = vcmp.eq.f32.partialorder %v570_v36, %v459_v2  ;;  %vm248_vm9 = vcmp.ge.s32.totalorder %v471_v11, 13 }
  0x24   :  { %v225_v15 = vadd.f32 %v394_v7, %v209_v10  ;;  %vm236_vm13 = vmor %vm228_vm4, %vm234_vm0  ;;  %v398_v16 = vsel %vm243_vm8, 1.0, %v435_v17  ;;  %vm259_vm11 = vcmp.gt.f32.partialorder %v590_v39, %v454_v1  ;;  %vm260_vm1 = vcmp.gt.f32.partialorder %v592_v40, %v459_v2 }
  0x25   :  { %v226_v18 = vadd.f32 %v395_v14, %v210_v13  ;;  %v397_v19 = vsel %vm236_vm13, 1.0, %v435_v17  ;;  %vm250_vm15 = vmand %vm246_vm12, %vm248_vm9  ;;  %vm262_vm2 = vcmp.eq.f32.partialorder %v592_v40, %v459_v2  ;;  %vm264_vm3 = vcmp.ge.s32.totalorder %v471_v11, 14 }
  0x26   :  { %v241_v20 = vadd.f32 %v396_v12, %v225_v15  ;;  %vm252_vm4 = vmor %vm244_vm14, %vm250_vm15  ;;  %v400_v21 = vsel %vm259_vm11, 1.0, %v435_v17  ;;  %vm275_vm5 = vcmp.gt.f32.partialorder %v620_v50, %v454_v1  ;;  %vm276_vm6 = vcmp.gt.f32.partialorder %v622_v51, %v459_v2 }
  0x27   :  { %v242_v24 = vadd.f32 %v397_v19, %v226_v18  ;;  %v399_v25 = vsel %vm252_vm4, 1.0, %v435_v17  ;;  %vm266_vm7 = vmand %vm262_vm2, %vm264_vm3  ;;  %vm278_vm10 = vcmp.eq.f32.partialorder %v622_v51, %v459_v2  ;;  %vm280_vm8 = vcmp.ge.s32.totalorder %v471_v11, 15 }
  0x28   :  { %v257_v26 = vadd.f32 %v398_v16, %v241_v20  ;;  %vm268_vm14 = vmor %vm260_vm1, %vm266_vm7  ;;  %v402_v27 = vsel %vm275_vm5, 1.0, %v435_v17  ;;  %v320_v30 = vmax.f32 %v318_v22, %v319_v23  ;;  %v340_v31 = vcvt.s32.f32 %v461_v3 }
  0x29   :  { %v258_v28 = vadd.f32 %v399_v25, %v242_v24  ;;  %v401_v29 = vsel %vm268_vm14, 1.0, %v435_v17  ;;  %vm282_vm0 = vmand %vm278_vm10, %vm280_vm8  ;;  %v341_v33 = vcvt.s32.f32 %v471_v11  ;;  %v291_v3 = vmul.f32 0.6931472, %v454_v1 }
  0x2a   :  { %v273_v32 = vadd.f32 %v400_v21, %v257_v26  ;;  %vm284_vm12 = vmor %vm276_vm6, %vm282_vm0  ;;  %v321_v36 = vrot.slane %v320_v30, 4  ;;  %v342_v37 = vadd.f32 2.0, %v340_v31  ;;  %v292_v45 = vmul.f32 0.6931472, %v459_v2 }
  0x2b   :  { %v274_v34 = vadd.f32 %v401_v29, %v258_v28  ;;  %v403_v35 = vsel %vm284_vm12, 1.0, %v435_v17  ;;  %v343_v39 = vadd.f32 2.0, %v341_v33  ;;  %v293_v46 = vmul.f32 1.442695, %v291_v3 }
  0x2c   :  { %v289_v38 = vadd.f32 %v402_v27, %v273_v32  ;;  %v322_v41 = vmax.f32 %v320_v30, %v321_v36  ;;  %407 = vlog2.f32 %v342_v37  ;;  %v295_v47 = vmul.f32 1.442695, %v292_v45 }
  0x2d   :  { %v290_v40 = vadd.f32 %v403_v35, %v274_v34  ;;  %409 = vlog2.f32 %v343_v39 }
  0x2e   :  { %v299_v42 = vadd.f32 2.0, %v289_v38  ;;  %v323_v44 = vrot.slane %v322_v41, 2 }
  0x2f   :  { %v300_v43 = vadd.f32 2.0, %v290_v40 }
  0x30   :  { %411 = vlog2.f32 %v299_v42  ;;  %v324_v11 = vmax.f32 %v322_v41, %v323_v44 }
  0x31   :  { %413 = vlog2.f32 %v300_v43 }
  0x32   :  { %v325_v17 = vrot.slane %v324_v11, 1  ;;  %415 = vpow2.f32 %v293_v46 }
  0x33   :  { %417 = vpow2.f32 %v295_v47 }
  0x34   :  { %v326_v48 = vmax.f32 %v324_v11, %v325_v17 }
  0x36   :  { %v327_v49 = vsub.f32 %v318_v22, %v326_v48  ;;  %v328_v50 = vsub.f32 %v319_v23, %v326_v48  ;;  %v408_v51 = vpop.eup %407 }
  0x37   :  { %v410_v52 = vpop.eup %409  ;;  %v345_v54 = vmul.f32 0.6931472, %v408_v51 }
  0x38   :  { %v329_v53 = vmul.f32 1.442695, %v327_v49  ;;  %v331_v1 = vmul.f32 1.442695, %v328_v50  ;;  %v347_v56 = vmul.f32 0.6931472, %v410_v52 }
  0x39   :  { %v348_v58 = vmul.f32 1.442695, %v345_v54 }
  0x3a   :  { %v412_v55 = vpop.eup %411  ;;  %419 = vpow2.f32 %v329_v53  ;;  %v349_v60 = vmul.f32 1.442695, %v347_v56 }
  0x3b   :  { %v414_v57 = vpop.eup %413  ;;  %v302_v2 = vmul.f32 0.6931472, %v412_v55  ;;  %421 = vpow2.f32 %v331_v1 }
  0x3c   :  { %v304_v59 = vmul.f32 0.6931472, %v414_v57  ;;  %423 = vrcp.f32 %v348_v58  ;;  %v416_v63 = vpop.eup %415 }
  0x3d   :  { %v305_v61 = vmul.f32 1.442695, %v302_v2  ;;  %425 = vrcp.f32 %v349_v60  ;;  %v418_v0 = vpop.eup %417  ;;  %v404_v4 = vadd.f32 -1.0, %v416_v63 }
  0x3e   :  { %v306_v62 = vmul.f32 1.442695, %v304_v59  ;;  %v405_v6 = vadd.f32 -1.0, %v418_v0 }
  0x3f   :  { %427 = vrcp.f32 %v305_v61 }
  0x40   :  { %429 = vrcp.f32 %v306_v62 }
  0x44   :  { %v420_v5 = vpop.eup %419 }
  0x45   :  { %v422_v7 = vpop.eup %421  ;;  %v352_v8 = vmul.f32 %v420_v5, %v404_v4 }
  0x46   :  { %v424_v9 = vpop.eup %423  ;;  %v333_v10 = vadd.f32 %v422_v7, %v420_v5  ;;  %v353_v12 = vmul.f32 %v422_v7, %v405_v6 }
  0x47   :  { %v426_v13 = vpop.eup %425  ;;  %v354_v14 = vmul.f32 %v424_v9, %v352_v8 }
  0x48   :  { %v334_v16 = vrot.slane %v333_v10, 4  ;;  %v355_v18 = vmul.f32 %v426_v13, %v353_v12 }
  0x49   :  { %v428_v15 = vpop.eup %427 }
  0x4a   :  { %v430_v19 = vpop.eup %429  ;;  %v309_v20 = vmul.f32 %v428_v15, %v404_v4  ;;  %v335_v22 = vadd.f32 %v334_v16, %v333_v10  ;;  %v356_v23 = vadd.f32 %v355_v18, %v354_v14 }
  0x4b   :  { %v310_v21 = vmul.f32 %v430_v19, %v405_v6 }
  0x4c   :  { %v336_v25 = vrot.slane %v335_v22, 2  ;;  %v357_v26 = vrot.slane %v356_v23, 4 }
  0x4d   :  { %v311_v24 = vadd.f32 %v310_v21, %v309_v20 }
  0x4e   :  { %v337_v28 = vadd.f32 %v336_v25, %v335_v22  ;;  %v358_v29 = vadd.f32 %v357_v26, %v356_v23 }
  0x4f   :  { %v312_v27 = vrot.slane %v311_v24, 4 }
  0x50   :  { %v338_v31 = vrot.slane %v337_v28, 1  ;;  %v359_v34 = vrot.slane %v358_v29, 2 }
  0x51   :  { %v313_v30 = vadd.f32 %v312_v27, %v311_v24 }
  0x52   :  { %v339_v33 = vadd.f32 %v338_v31, %v337_v28  ;;  %v360_v37 = vadd.f32 %v359_v34, %v358_v29 }
  0x53   :  { %v314_v32 = vrot.slane %v313_v30, 2 }
  0x54   :  { %431 = vrcp.f32 %v339_v33  ;;  %v361_v40 = vrot.slane %v360_v37, 1 }
  0x55   :  { %v315_v35 = vadd.f32 %v314_v32, %v313_v30 }
  0x56   :  { %v362_v41 = vadd.f32 %v361_v40, %v360_v37 }
  0x57   :  { %v316_v36 = vrot.slane %v315_v35, 1 }
  0x59   :  { %v317_v38 = vadd.f32 %v316_v36, %v315_v35 }
  0x5b   :  { %v365_v39 = vadd.f32 1e-08, %v317_v38 }
  0x5d   :  { %433 = vrcp.f32 %v365_v39 }
  0x5e   :  { %v432_v42 = vpop.eup %431 }
  0x5f   :  { %v364_v3 = vmul.f32 %v432_v42, %v362_v41 }
  0x67   :  { %v434_v43 = vpop.eup %433 }
  0x68   :  { %v367_v44 = vmul.f32 %v434_v43, %v364_v3 }
  0x6a   :  { %v368_v45 = vsub.f32 1.0, %v367_v44 }
  0x6c   :  { %369 = vst [vmem:[%s755_s2] sm:$0x1] %v368_v45 }

</bundles_post_ra>
